<compile_context>
chip_gen: v6e
topology: v6e:2x2x1
jax: 0.10.0
libtpu: 0.0.40
codegen_flags: <defaults>
</compile_context>

<pallas_src>
import functools

import jax
import jax.numpy as jnp
from jax import lax
from jax.experimental import pallas as pl
from jax.experimental.pallas import tpu as pltpu

_LANES = 128
_VMEM_BUDGET_BYTES = 12 * 1024 * 1024   # live double-buffered block budget
_VMEM_LIMIT_BYTES = 32 * 1024 * 1024    # safe scoped limit on v5e/v6e/v7x


def _onehot_gather_kernel(fwd_ref, x_ref, o_ref):
    # fwd_ref: VMEM (G, t_keep, 1) int32 -- truncated forward perms for G batches
    # x_ref:   VMEM (T, G*c_pad)         -- G lane-aligned token strips
    # o_ref:   VMEM (t_keep, G*c_pad)    -- gathered (unmasked) tokens
    G = fwd_ref.shape[0]
    t_keep = o_ref.shape[0]
    T = x_ref.shape[0]
    c_pad = x_ref.shape[1] // G

    col = lax.broadcasted_iota(jnp.int32, (t_keep, T), 1)
    # Static unroll over the G sub-strips (G is small); each iteration is an
    # independent (t_keep, T) x (T, c_pad) MXU matmul on a lane-aligned slice.
    for g in range(G):
        onehot = (col == fwd_ref[g]).astype(x_ref.dtype)  # exactly one 1.0/row
        strip = x_ref[:, g * c_pad:(g + 1) * c_pad]
        o_ref[:, g * c_pad:(g + 1) * c_pad] = jnp.dot(
            onehot, strip, preferred_element_type=jnp.float32
        ).astype(o_ref.dtype)


def _pick_group_size(B, T, t_keep, c_pad, itemsize):
    """Largest divisor of B whose double-buffered blocks fit the VMEM budget,
    preferring an even grid length >= 2 (megacore balance on v7x)."""
    def live_bytes(g):
        return 2 * ((T + t_keep) * g * c_pad * itemsize + g * t_keep * 4)

    divisors = sorted((g for g in range(1, B + 1) if B % g == 0), reverse=True)
    fitting = [g for g in divisors if live_bytes(g) <= _VMEM_BUDGET_BYTES]
    if not fitting:
        return 1
    for g in fitting:
        grid_len = B // g
        if grid_len >= 2 and grid_len % 2 == 0:
            return g
    return fitting[0]


@functools.partial(jax.jit, static_argnames=("mask_ratio",))
def patch_shuffle(patches_tbc, fwd_bt, mask_ratio):
    """patches_tbc: (T, B, C); fwd_bt: (B, T) int32 per-batch permutations.

    Returns (unmasked (T_keep, B, C), backward_indexes (T, B) int32),
    matching PatchShuffle.forward.
    """
    T, B, C = patches_tbc.shape
    if not jnp.issubdtype(patches_tbc.dtype, jnp.floating):
        raise TypeError(
            "patch_shuffle MXU one-hot gather requires a floating dtype; "
            f"got {patches_tbc.dtype}"
        )
    t_keep = int(T * (1.0 - mask_ratio))  # same truncation as the PyTorch module

    # Lane-align the channel dim only when needed (ViT widths need no pad).
    c_pad = ((C + _LANES - 1) // _LANES) * _LANES
    x = patches_tbc
    if c_pad != C:
        x = jnp.pad(x, ((0, 0), (0, 0), (0, c_pad - C)))
    # Free reshape (trailing contiguous dims): batch b owns columns
    # [b*c_pad, (b+1)*c_pad) of the (T, B*c_pad) slab.
    x2d = x.reshape(T, B * c_pad)

    fwd = fwd_bt[:, :t_keep].astype(jnp.int32)[:, :, None]  # (B, t_keep, 1)

    itemsize = jnp.dtype(patches_tbc.dtype).itemsize
    G = _pick_group_size(B, T, t_keep, c_pad, itemsize)
    grid_len = B // G

    cost = pl.CostEstimate(
        flops=2 * B * t_keep * T * c_pad,
        transcendentals=0,
        bytes_accessed=int((T + t_keep) * B * c_pad * itemsize + B * t_keep * 4),
    )

    grid_spec = pltpu.PrefetchScalarGridSpec(
        num_scalar_prefetch=0,
        grid=(grid_len,),
        in_specs=[
            pl.BlockSpec((G, t_keep, 1), lambda g: (g, 0, 0)),   # fwd indexes
            pl.BlockSpec((T, G * c_pad), lambda g: (0, g)),      # G batch strips
        ],
        out_specs=pl.BlockSpec((t_keep, G * c_pad), lambda g: (0, g)),
    )

    out2d = pl.pallas_call(
        _onehot_gather_kernel,
        out_shape=jax.ShapeDtypeStruct((t_keep, B * c_pad), patches_tbc.dtype),
        grid_spec=grid_spec,
        compiler_params=pltpu.CompilerParams(
            dimension_semantics=("parallel",),
            vmem_limit_bytes=_VMEM_LIMIT_BYTES,
        ),
        cost_estimate=cost,
    )(fwd, x2d)

    unmasked_tbc = out2d.reshape(t_keep, B, c_pad)
    if c_pad != C:
        unmasked_tbc = unmasked_tbc[:, :, :C]

    # Backward indexes: O(T) scatter-based permutation inverse (no XLA sort).
    iota_t = jnp.arange(T, dtype=jnp.int32)
    bwd_bt = jnp.zeros((B, T), jnp.int32).at[
        jnp.arange(B, dtype=jnp.int32)[:, None], fwd_bt
    ].set(jnp.broadcast_to(iota_t, (B, T)))
    return unmasked_tbc, bwd_bt.T  # (t_keep, B, C), (T, B)


def _reference(patches_tbc, fwd_bt, mask_ratio):
    T, B, C = patches_tbc.shape
    t_keep = int(T * (1.0 - mask_ratio))
    shuffled = jnp.stack(
        [patches_tbc[fwd_bt[b], b, :] for b in range(B)], axis=1
    )  # (T, B, C)
    return shuffled[:t_keep]


if __name__ == "__main__":
    key = jax.random.PRNGKey(0)
    T, B, C = 16, 4, 128
    mask_ratio = 0.5

    k_data, k_perm = jax.random.split(key)
    patches = jax.random.normal(k_data, (T, B, C), dtype=jnp.float32)

    # deterministic per-batch permutations (stand-in for numpy.random.permutation)
    fwd_bt = jnp.stack(
        [jax.random.permutation(jax.random.fold_in(k_perm, b), T) for b in range(B)],
        axis=0,
    ).astype(jnp.int32)  # (B, T)

    unmasked, backward_idx = patch_shuffle(patches, fwd_bt, mask_ratio)
    unmasked = jax.block_until_ready(unmasked)
    backward_idx = jax.block_until_ready(backward_idx)

    ref = _reference(patches, fwd_bt, mask_ratio)
    assert unmasked.shape == (int(T * (1 - mask_ratio)), B, C)
    assert backward_idx.shape == (T, B)
    assert jnp.allclose(unmasked, ref), "kernel output mismatch"
    # backward indexes invert the forward permutation
    for b in range(B):
        assert jnp.array_equal(fwd_bt[b][backward_idx[:, b]], jnp.arange(T))

    print("KERNEL_OK")
</pallas_src>

<mosaic_0001>
module attributes {stable_mosaic.version = 11 : i64} {
  func.func @_onehot_gather_kernel(%arg0: i32, %arg1: memref<2x8x1xi32, #tpu.memory_space<vmem>>, %arg2: memref<16x256xf32, #tpu.memory_space<vmem>>, %arg3: memref<8x256xf32, #tpu.memory_space<vmem>>) attributes {dimension_semantics = [#tpu.dimension_semantics<parallel>], iteration_bounds = array<i64: 2>, scalar_prefetch = 0 : i64, scratch_operands = 0 : i64, tpu.core_type = #tpu.core_type<tc>, window_params = [{transform_indices = @transform_0, window_bounds = array<i64: 2, 8, 1>}, {transform_indices = @transform_1, window_bounds = array<i64: 16, 256>}, {transform_indices = @transform_2, window_bounds = array<i64: 8, 256>}]} {
    %0 = tpu.iota {dimensions = array<i32: 1>} : vector<8x16xi32>
    %c0 = arith.constant 0 : index
    %c0_0 = arith.constant 0 : index
    %c0_1 = arith.constant 0 : index
    %1 = vector.load %arg1[%c0, %c0_0, %c0_1] : memref<2x8x1xi32, #tpu.memory_space<vmem>>, vector<1x8x1xi32>
    %2 = vector.shape_cast %1 : vector<1x8x1xi32> to vector<8x1xi32>
    %3 = vector.broadcast %2 : vector<8x1xi32> to vector<8x16xi32>
    %4 = arith.cmpi eq, %0, %3 : vector<8x16xi32>
    %5 = arith.extui %4 : vector<8x16xi1> to vector<8x16xi32>
    %6 = arith.sitofp %5 : vector<8x16xi32> to vector<8x16xf32>
    %c0_2 = arith.constant 0 : index
    %c0_3 = arith.constant 0 : index
    %7 = vector.load %arg2[%c0_2, %c0_3] : memref<16x256xf32, #tpu.memory_space<vmem>>, vector<16x128xf32>
    %cst = arith.constant dense<0.000000e+00> : vector<8x128xf32>
    %8 = tpu.matmul %6, %7, %cst {dimension_numbers = #tpu.dot_dimension_numbers<[1], [0], [0], [1], [0, 0, 1, 1], [], []>} : vector<8x16xf32>, vector<16x128xf32>, vector<8x128xf32> -> vector<8x128xf32>
    %c0_4 = arith.constant 0 : index
    %c0_5 = arith.constant 0 : index
    %9 = vector.load %arg3[%c0_4, %c0_5] : memref<8x256xf32, #tpu.memory_space<vmem>>, vector<8x128xf32>
    tpu.vector_store %arg3[%c0_4, %c0_5], %8 {strides = array<i32>} : memref<8x256xf32, #tpu.memory_space<vmem>>, vector<8x128xf32>,
    %c1 = arith.constant 1 : index
    %c0_6 = arith.constant 0 : index
    %c0_7 = arith.constant 0 : index
    %10 = vector.load %arg1[%c1, %c0_6, %c0_7] : memref<2x8x1xi32, #tpu.memory_space<vmem>>, vector<1x8x1xi32>
    %11 = vector.shape_cast %10 : vector<1x8x1xi32> to vector<8x1xi32>
    %12 = vector.broadcast %11 : vector<8x1xi32> to vector<8x16xi32>
    %13 = arith.cmpi eq, %0, %12 : vector<8x16xi32>
    %14 = arith.extui %13 : vector<8x16xi1> to vector<8x16xi32>
    %15 = arith.sitofp %14 : vector<8x16xi32> to vector<8x16xf32>
    %c0_8 = arith.constant 0 : index
    %c128 = arith.constant 128 : index
    %16 = vector.load %arg2[%c0_8, %c128] : memref<16x256xf32, #tpu.memory_space<vmem>>, vector<16x128xf32>
    %cst_9 = arith.constant dense<0.000000e+00> : vector<8x128xf32>
    %17 = tpu.matmul %15, %16, %cst_9 {dimension_numbers = #tpu.dot_dimension_numbers<[1], [0], [0], [1], [0, 0, 1, 1], [], []>} : vector<8x16xf32>, vector<16x128xf32>, vector<8x128xf32> -> vector<8x128xf32>
    %c0_10 = arith.constant 0 : index
    %c128_11 = arith.constant 128 : index
    %18 = vector.load %arg3[%c0_10, %c128_11] : memref<8x256xf32, #tpu.memory_space<vmem>>, vector<8x128xf32>
    tpu.vector_store %arg3[%c0_10, %c128_11], %17 {strides = array<i32>} : memref<8x256xf32, #tpu.memory_space<vmem>>, vector<8x128xf32>,
    return
  }
  func.func @transform_0(%arg0: i32) -> (i32, i32, i32) {
    %c0_i32 = arith.constant 0 : i32
    %c0_i32_0 = arith.constant 0 : i32
    %c0_i32_1 = arith.constant 0 : i32
    return %arg0, %c0_i32, %c0_i32_0 : i32, i32, i32
  }
  func.func @transform_1(%arg0: i32) -> (i32, i32) {
    %c0_i32 = arith.constant 0 : i32
    %c0_i32_0 = arith.constant 0 : i32
    return %c0_i32, %arg0 : i32, i32
  }
  func.func @transform_2(%arg0: i32) -> (i32, i32) {
    %c0_i32 = arith.constant 0 : i32
    %c0_i32_0 = arith.constant 0 : i32
    return %c0_i32, %arg0 : i32, i32
  }
}

</mosaic_0001>

<bundles_post_ra>
// kernel: patch_shuffle.1
= control target key start
LH: loop header
LB: loop body
LE: loop exit
PB: predicated region body
PF: predicated region fallthrough
CT: control target
= control target key end

     0   :  { %s549_s9 = smov 0   ;;  %s551_s10 = smov 0   ;;  %s607_s0 = inlined_call_operand.vmem [shape: s32[4,8,1], index: 0, kind: input, shape index: {}]   ;;  %s608_s1 = inlined_call_operand.vmem [shape: f32[16,512], index: 1, kind: input, shape index: {}]   ;;  %s609_s2 = inlined_call_operand.vmem [shape: f32[8,512], index: 2, kind: output, shape index: {}]  }
   0x1   :  { %s553_s11 = smov 0  }
   0x2 LB: > { %s438_s12 = sadd.s32 4294967295, %s529_s11   ;;  %s566_s13 = sadd.s32 1, %s529_s11   ;;  %s529_s11 = sphi %s553_s11, %s612_s11   ;;  %s525_s10 = sphi %s551_s10, %s611_s10   ;;  %s521_s9 = sphi %s549_s9, %s610_s9  }
   0x3   : > { %s42_s14 = ssub.s32 %s529_s11, %s566_s13  ;;  %s45_s15 = sadd.s32 1, %s525_s10 }
   0x4   : > { %p43_p0 = scmp.eq.s32.totalorder %s42_s14, 0  ;;  %p52_p1 = scmp.ne.s32.totalorder %s525_s10, %s521_s9 }
   0x5   : > { %p53_p2 = scmp.eq.s32.totalorder %s529_s11, 0  ;;  %p441_p4 = scmp.ge.s32.totalorder %s529_s11, 2 }
   0x6   : > { %s575_s16 = scalar_select %p43_p0, %s525_s10, %s45_s15  }
   0x7   : > { %p54_p3 = por %p53_p2, %p52_p1  ;;  %104 = sbr.rel (%p441_p4) target bundleno = 18 (0x12), region = 16 }
   0xc   : > { %116 = sbr.rel (!%p54_p3) target bundleno = 18 (0x12), region = 24  ;;  %s118_s17 = sand.u32 (%p54_p3), 1, %s525_s10  }
   0xd   : > { %s458_s18 = sshll.u32 (%p54_p3), %s529_s11, 4  ;;  %s442_s19 = sshll.u32 (%p54_p3), %s118_s17, 5 }
   0xe   : > { %s123_s22 = scalar_lea.vmem (%p54_p3), %s608_s1, %s458_s18  ;;  %s120_s23 = scalar_lea.vmem (%p54_p3), [#allocation2], %s442_s19 }
   0xf   : > { %v136_v0 = vld [vmem:[%s123_s22] sm:$0xff] (%p54_p3)  ;;  %v138_v1 = vld [vmem:[%s123_s22 + $0x8] sm:$0xff] (%p54_p3) }
  0x10   : > { %v140_v2 = vld [vmem:[%s123_s22 + $0x20] sm:$0xff] (%p54_p3)  ;;  %137 = vst [vmem:[%s120_s23] sm:$0xff] (%p54_p3), %v136_v0  ;;  %139 = vst [vmem:[%s120_s23 + $0x8] sm:$0xff] (%p54_p3), %v138_v1  ;;  %v142_v3 = vld [vmem:[%s123_s22 + $0x28] sm:$0xff] (%p54_p3) }
  0x11   : > { %141 = vst [vmem:[%s120_s23 + $0x10] sm:$0xff] %v140_v2  ;;  %143 = vst [vmem:[%s120_s23 + $0x18] sm:$0xff] %v142_v3 }
  0x12 PF: > { %p445_p5 = scmp.ge.s32.totalorder %s529_s11, 1  ;;  %p148_p6 = scmp.lt.s32.totalorder %s529_s11, 3 }
  0x14   : > { %p149_p7 = pnand %p445_p5, %p148_p6 }
  0x15   : > { %s447_s24 = sshll.u32 (!%p149_p7), %s438_s12, 1  ;;  %s155_s25 = sand.u32 (!%p149_p7), 1, %s521_s9  }
  0x16   : > { %152 = sbr.rel (%p149_p7) target bundleno = 357 (0x165), region = 47  ;;  %p182_p8 = scmp.lt.s32.totalorder (!%p149_p7), %s447_s24, 3 }
  0x17   : > { %s446_s26 = sshll.u32 (!%p149_p7), %s155_s25, 5 }
  0x18   : > { %s157_s27 = scalar_lea.vmem (!%p149_p7), [#allocation2], %s446_s26 }
  0x1b   : > { %v531_v4 = vmov 0   ;;  %v532_v5 = vmov 0.0   ;;  %s614_s24 = smov (!%p182_p8, %s447_s24), 3  ;;  %v204_v6 = vld [vmem:[%s157_s27 + $0x10] sm:$0xff]  ;;  %v203_v7 = vld [vmem:[%s157_s27] sm:$0xff]  ;;  %vm533_vm0 = vmmov 0   ;;  %v194_v12 = vlaneseq }
  0x1c   : > { %506 = vset.pattern.permute.xlu0 %v531_v4  ;;  %465 = vmatprep.subr.mxu0 %v532_v5  ;;  %s448_s28 = sshll.u32 %s614_s24, 3  ;;  %v289_v8 = vld [vmem:[%s157_s27 + $0x18] sm:$0xff]  ;;  %v288_v10 = vld [vmem:[%s157_s27 + $0x8] sm:$0xff]  ;;  %vm205_vm1 = vcmask 130048  }
  0x1d   : > { %472 = vmatprep.subr.mxu1 %v532_v5  ;;  %466 = vmatpush3.msra.mxu0 %v204_v6  ;;  %s185_s3 = scalar_lea.vmem %s607_s0, %s448_s28  ;;  %v195_v13 = vand.u32 127, %v194_v12  ;;  %s192_s6 = scalar_lea.vmem %s609_s2, %s448_s28 }
  0x1e   : > { %467 = vmatprep.subr.mxu0 %v532_v5  ;;  %469 = vmatprep.mubr.msk.f32.mxu0 %vm533_vm0, %v532_v5  ;;  %v196_v9 = vld [vmem:[%s185_s3] sm:$0xff]  ;;  %v453_v11 = vld [vmem:[%s185_s3 + $0x8] sm:$0xff] }
  0x1f   : > { %468 = vmatpush3.msra.mxu0 %v203_v7  ;;  %476 = vmatprep.mubr.msk.f32.mxu1 %vm533_vm0, %v532_v5 }
  0x20   : > { %473 = vmatpush3.msra.mxu1 %v289_v8  ;;  %198 = vperm.xlu0 %506, %v196_v9  }
  0x21   : > { %474 = vmatprep.subr.mxu1 %v532_v5 }
  0x22   : > { %475 = vmatpush3.msra.mxu1 %v288_v10 }
  0x24   : > { %283 = vperm.xlu0 %506, %v453_v11  }
  0x9b   : > { %v199_v14 = vpop.permute.xlu0 %198 }
  0x9c   : > { %vm200_vm2 = vcmp.eq.s32.totalorder %v195_v13, %v199_v14 }
  0x9d   : > { %v451_v15 = vsel %vm200_vm2, 1.0, %v532_v5 }
  0x9e   : > { %470 = vmatmul.mubr.msk.f32.vlgmr.msra.gmra.mxu0 %vm205_vm1, %v451_v15 }
  0x9f   : > { %v284_v16 = vpop.permute.xlu0 %283 }
  0xa0   : > { %vm285_vm3 = vcmp.eq.s32.totalorder %v195_v13, %v284_v16 }
  0xa1   : > { %v454_v17 = vsel %vm285_vm3, 1.0, %v532_v5 }
  0xa2   : > { %477 = vmatmul.mubr.msk.f32.vlgmr.msra.gmra.mxu1 %vm205_vm1, %v454_v17 }
 0x15e   : > { %v275_v18 = vpop.f32.mrf.mxu0 }
 0x15f   : > { %279 = vst [vmem:[%s192_s6] sm:$0xff] %v275_v18 }
 0x160   : > { %v471_v19 = vpop.f32.mrf.mxu0 }
 0x162   : > { %v359_v20 = vpop.f32.mrf.mxu1 }
 0x163   : > { %363 = vst [vmem:[%s192_s6 + $0x8] sm:$0xff] %v359_v20 }
 0x164   : > { %v478_v21 = vpop.f32.mrf.mxu1 }
 0x165 PF: > { %p9_p9 = scmp.ge.s32.totalorder %s566_s13, 4   ;;  %s610_s9 = smov %s525_s10 }
 0x166   : > { %s611_s10 = smov %s575_s16  ;;  %s612_s11 = smov %s566_s13 }
 0x167   :  { %11 = sbr.rel (!%p9_p9) target bundleno = 2 (0x2), region = 90 }

</bundles_post_ra>
